<compile_context>
chip_gen: v6e
topology: v6e:2x2x1
jax: 0.10.0
libtpu: 0.0.40
codegen_flags: <defaults>
</compile_context>

<pallas_src>
import numpy as np
import jax
import jax.numpy as jnp
from jax.experimental import pallas as pl
from jax.experimental.pallas import tpu as pltpu

_LANES = 128
_TILE_ROWS = 2048  # multiple of 8 (f32), 16 (bf16) and 32 (int8/fp8) sublane packing


def _copy_kernel(x_ref, o_ref):
    # Pure pass-through: full-tile unmasked load + store.
    o_ref[...] = x_ref[...]


def _sublane_pack(dtype) -> int:
    """Packed sublane count per vreg for this dtype (8 f32, 16 bf16, 32 int8)."""
    itemsize = jnp.dtype(dtype).itemsize
    return max(8, 32 // max(itemsize, 1))


def input_shape_forward(x, *, use_pallas: bool = True):
    """Pallas equivalent of InputShape.forward.

    Returns (y, input_shape) where y == x element-for-element and input_shape
    mirrors the PyTorch side effect `self.input_shape = x.shape`.
    """
    orig_shape = x.shape

    if not use_pallas:
        # Highest-value optimization from the review: an identity needs no
        # kernel at all -> ~0 us instead of 2*bytes/HBM_BW.
        return x, orig_shape

    n = x.size
    pack = _sublane_pack(x.dtype)
    chunk = _LANES * pack  # pad quantum keeps rows a multiple of the sublane pack

    flat = x.reshape(-1)
    n_pad = (-n) % chunk
    if n_pad:
        flat = jnp.pad(flat, (0, n_pad))
    rows = flat.size // _LANES
    x2d = flat.reshape(rows, _LANES)

    # Block small enough for v7x VMEM, big enough to hit HBM roofline; never
    # larger than the array itself (small inputs -> single full block).
    tile_rows = min(_TILE_ROWS, rows)
    grid = (pl.cdiv(rows, tile_rows),)

    y2d = pl.pallas_call(
        _copy_kernel,
        out_shape=jax.ShapeDtypeStruct((rows, _LANES), x.dtype),
        grid_spec=pl.GridSpec(
            grid=grid,
            in_specs=[pl.BlockSpec((tile_rows, _LANES), lambda i: (i, 0))],
            out_specs=pl.BlockSpec((tile_rows, _LANES), lambda i: (i, 0)),
        ),
        input_output_aliases={0: 0},  # output reuses the input HBM buffer
        compiler_params=pltpu.CompilerParams(
            dimension_semantics=("parallel",),  # shard tiles across v7x's 2 TCs
        ),
    )(x2d)

    y_flat = y2d.reshape(-1)
    if n_pad:
        y_flat = y_flat[:n]
    y = y_flat.reshape(orig_shape)
    return y, orig_shape


if __name__ == "__main__":
    key = jax.random.PRNGKey(0)
    # NCHW input, small shapes: batch=2, channels=4, spatial=16x16
    x = jax.random.normal(key, (2, 4, 16, 16), dtype=jnp.float32)
    x_host = np.asarray(x)  # host copy so aliasing/donation cannot skew the check

    # Pallas kernel path (128-divisible size).
    y, recorded_shape = input_shape_forward(x)
    jax.block_until_ready(y)
    assert recorded_shape == x.shape
    assert y.shape == x.shape and y.dtype == x.dtype
    assert np.array_equal(np.asarray(y), x_host)

    # Pallas kernel path, ragged (non-128-divisible) size + packed dtype:
    # exercises the pad-to-(rows, 128) lane/sublane-dense slab.
    x2 = jax.random.normal(jax.random.PRNGKey(0), (3, 5, 7), dtype=jnp.bfloat16)
    x2_host = np.asarray(x2)
    y2, s2 = input_shape_forward(x2)
    jax.block_until_ready(y2)
    assert s2 == x2.shape and y2.shape == x2.shape and y2.dtype == x2.dtype
    assert np.array_equal(np.asarray(y2), x2_host)

    # Zero-cost identity path (no kernel, no HBM traffic).
    y3, s3 = input_shape_forward(x, use_pallas=False)
    assert s3 == x.shape and y3 is x

    print("KERNEL_OK")
</pallas_src>

<mosaic_0001>
module attributes {stable_mosaic.version = 11 : i64} {
  func.func @_copy_kernel(%arg0: i32, %arg1: memref<16x128xf32, #tpu.memory_space<vmem>>, %arg2: memref<16x128xf32, #tpu.memory_space<vmem>>) attributes {dimension_semantics = [#tpu.dimension_semantics<parallel>], iteration_bounds = array<i64: 1>, scalar_prefetch = 0 : i64, scratch_operands = 0 : i64, tpu.core_type = #tpu.core_type<tc>, window_params = [{transform_indices = @transform_0, window_bounds = array<i64: 16, 128>}, {transform_indices = @transform_1, window_bounds = array<i64: 16, 128>}]} {
    %c0 = arith.constant 0 : index
    %c0_0 = arith.constant 0 : index
    %0 = vector.load %arg1[%c0, %c0_0] : memref<16x128xf32, #tpu.memory_space<vmem>>, vector<16x128xf32>
    %c0_1 = arith.constant 0 : index
    %c0_2 = arith.constant 0 : index
    %1 = vector.load %arg2[%c0_1, %c0_2] : memref<16x128xf32, #tpu.memory_space<vmem>>, vector<16x128xf32>
    tpu.vector_store %arg2[%c0_1, %c0_2], %0 {strides = array<i32>} : memref<16x128xf32, #tpu.memory_space<vmem>>, vector<16x128xf32>,
    return
  }
  func.func @transform_0(%arg0: i32) -> (i32, i32) {
    %c0_i32 = arith.constant 0 : i32
    %c0_i32_0 = arith.constant 0 : i32
    return %arg0, %c0_i32 : i32, i32
  }
  func.func @transform_1(%arg0: i32) -> (i32, i32) {
    %c0_i32 = arith.constant 0 : i32
    %c0_i32_0 = arith.constant 0 : i32
    return %arg0, %c0_i32 : i32, i32
  }
}

</mosaic_0001>

<bundles_post_ra>
// kernel: tpu_custom_call.1
= control target key start
LH: loop header
LB: loop body
LE: loop exit
PB: predicated region body
PF: predicated region fallthrough
CT: control target
= control target key end

     0   :  { %6 = vsyncpa [#allocation3], 0  ;;  %s112_s0 = inlined_call_operand.hbm [shape: f32[16,128], index: 0, kind: input, shape index: {}, may-alias: {0,1}]   ;;  %s113_s1 = inlined_call_operand.hbm [shape: f32[16,128], index: 1, kind: output, shape index: {}, may-alias: {0,1}]  }
   0x1   :  { %7 = vsyncpa [#allocation4], 0  ;;  %s92_s6 = smov [#allocation2]  }
   0x2   :  { %s13_s7 = sshll.u32 %s92_s6, 4  ;;  %s14_s7 = int_to_ptr.vmem [resolvable:$true] %s13_s7 }
   0x3   :  { %s56_s8 = scalar_lea.vmem %s14_s7, 256  ;;  %p61_p1 = scmp.lt.s32.totalorder %s14_s7, %s14_s7 }
   0x4   :  { %p57_p0 = scmp.ne.s32.totalorder %s14_s7, %s56_s8  ;;  %p62_p2 = scmp.lt.s32.totalorder %s56_s8, %s56_s8 }
   0x6   :  { %p63_p3 = por %p62_p2, %p61_p1 }
   0x8   :  { %p64_p4 = pnand %p63_p3, %p57_p0 }
   0xa   :  { %67 = shalt.err (!%p64_p4)
}
   0xb   :  { %s93_s9 = smov 128   ;;  %s94_s10 = smov 8  }
   0xc   :  { %19 = dma.hbm_to_vmem [thread:$0]  %s112_s0, 256, %s14_s7, [#allocation3], %s93_s9, %s93_s9, %s94_s10  }
   0xd   :  { %88 = dma.done.wait [#allocation3], 256  }
   0xe   :  { %89 = vsyncadd [#allocation3], 4294967040  ;;  %s95_s13 = smov [#allocation5]   ;;  %v23_v0 = vld [vmem:[#allocation2] sm:$0xff]  ;;  %v24_v1 = vld [vmem:[#allocation2 + $0x8] sm:$0xff] }
   0xf   :  { %s32_s14 = sshll.u32 %s95_s13, 4  ;;  %25 = vst [vmem:[#allocation5] sm:$0xff] %v23_v0  ;;  %26 = vst [vmem:[#allocation5 + $0x8] sm:$0xff] %v24_v1  ;;  %s33_s14 = int_to_ptr.vmem [resolvable:$true] %s32_s14 }
  0x10   :  { %s68_s15 = scalar_lea.vmem %s33_s14, 256  ;;  %p73_p6 = scmp.lt.s32.totalorder %s33_s14, %s33_s14 }
  0x11   :  { %p69_p5 = scmp.ne.s32.totalorder %s33_s14, %s68_s15  ;;  %p74_p7 = scmp.lt.s32.totalorder %s68_s15, %s68_s15 }
  0x13   :  { %p75_p8 = por %p74_p7, %p73_p6 }
  0x15   :  { %p76_p9 = pnand %p75_p8, %p69_p5 }
  0x17   :  { %79 = shalt.err (!%p76_p9)
}
  0x18   :  { %38 = dma.vmem_to_hbm [thread:$0]  %s33_s14, 256, %s113_s1, [#allocation4], %s93_s9, %s93_s9, %s94_s10  }
  0x19   :  { %90 = dma.done.wait [#allocation4], 256  }
  0x1a   :  { %91 = vsyncadd [#allocation4], 4294967040 }
  0x1b   :  { %42 = vsyncpa [#allocation3], 1 }
  0x1c   :  { %43 = vsyncpa [#allocation4], 1 }

</bundles_post_ra>
